<compile_context>
chip_gen: v7x
topology: tpu7x:2x2x1
jax: 0.10.0
libtpu: 0.0.40
codegen_flags: <defaults>
</compile_context>

<pallas_src>
import jax
import jax.numpy as jnp
from jax.experimental import pallas as pl
from jax.experimental.pallas import tpu as pltpu

_PACK = 8  # batch rows packed into one lane-row (sublane packing factor)
_VMEM_LIMIT = 32 * 1024 * 1024  # scoped VMEM budget, safe on v5e/v6e/v7x


def _round_up(n, m):
    return ((n + m - 1) // m) * m


def _block_diag(w, p):
    """(d, h) -> (p*d, p*h) block-diagonal replication of w."""
    d, h = w.shape
    eye = jnp.eye(p, dtype=w.dtype)
    return jnp.einsum("ij,dh->idjh", eye, w).reshape(p * d, p * h)


def _cost_estimate(batch, dim, h1):
    flops = 2 * batch * (2 * dim) * h1 + 2 * batch * h1 + batch * (h1 + 1)
    bytes_accessed = (2 * batch * dim + batch + 2 * dim * h1 + 2 * h1 + 1) * 4
    return pl.CostEstimate(flops=int(flops), transcendentals=0,
                           bytes_accessed=int(bytes_accessed))


# ---------------------------------------------------------------------------
# Packed-lane fast path (B % 8 == 0)
# ---------------------------------------------------------------------------

def _critic_packed_kernel(s0_ref, s1_ref, w1a_ref, w1b_ref, b1_ref,
                          w2_ref, b2_ref, out_ref):
    # s0_ref/s1_ref : (TBp, P*dim)    w1a_ref/w1b_ref : (P*dim, P*H1)
    # b1_ref        : (1, P*H1)       w2_ref          : (P*H1, P)
    # b2_ref        : (1, 1)          out_ref         : (TBp, P)
    h = jnp.dot(s0_ref[...], w1a_ref[...], preferred_element_type=jnp.float32)
    h = h + jnp.dot(s1_ref[...], w1b_ref[...],
                    preferred_element_type=jnp.float32)
    h = jnp.maximum(h + b1_ref[...], 0.0)

    out = jnp.dot(h, w2_ref[...], preferred_element_type=jnp.float32)
    out_ref[...] = jnp.maximum(out + b2_ref[...], 0.0).astype(out_ref.dtype)


def _forward_packed(s0, s1, w1a, w1b, b1, w2c, b2c, tbp):
    B, dim = s0.shape
    H1 = w1a.shape[1]
    P = _PACK
    Bp = B // P

    # Free, row-major-contiguous views: batch rows fill the lane dim.
    s0p = s0.reshape(Bp, P * dim)
    s1p = s1.reshape(Bp, P * dim)

    # 8x block-diagonal weights (tiny; VMEM-resident across the grid).
    w1a_bd = _block_diag(w1a, P)            # (P*dim, P*H1)
    w1b_bd = _block_diag(w1b, P)            # (P*dim, P*H1)
    w2_bd = _block_diag(w2c, P)             # (P*H1, P)
    b1_rep = jnp.tile(b1, (1, P))           # (1, P*H1)

    # Tile: >= 2 grid steps when the batch allows (v7x megacore), capped at
    # tbp packed rows (default 2048 -> 16K batch rows, ~2 MiB input per step
    # at dim=16), always a multiple of 8 unless it equals the full array dim.
    if Bp <= 16:
        TBp = Bp
    else:
        TBp = min(tbp, _round_up(pl.cdiv(Bp, 2), 8))
    grid = (pl.cdiv(Bp, TBp),)

    out = pl.pallas_call(
        _critic_packed_kernel,
        out_shape=jax.ShapeDtypeStruct((Bp, P), jnp.float32),
        grid_spec=pl.GridSpec(
            grid=grid,
            in_specs=[
                pl.BlockSpec((TBp, P * dim), lambda i: (i, 0)),   # s0 packed
                pl.BlockSpec((TBp, P * dim), lambda i: (i, 0)),   # s1 packed
                pl.BlockSpec(w1a_bd.shape, lambda i: (0, 0)),     # VMEM-resident
                pl.BlockSpec(w1b_bd.shape, lambda i: (0, 0)),
                pl.BlockSpec(b1_rep.shape, lambda i: (0, 0)),
                pl.BlockSpec(w2_bd.shape, lambda i: (0, 0)),
                pl.BlockSpec(b2c.shape, lambda i: (0, 0)),
            ],
            out_specs=pl.BlockSpec((TBp, P), lambda i: (i, 0)),
        ),
        compiler_params=pltpu.CompilerParams(
            dimension_semantics=("parallel",),
            vmem_limit_bytes=_VMEM_LIMIT,
        ),
        cost_estimate=_cost_estimate(B, dim, H1),
    )(s0p, s1p, w1a_bd, w1b_bd, b1_rep, w2_bd, b2c)

    return out.reshape(B)                   # row 8q+j is element (q, j)


# ---------------------------------------------------------------------------
# Row-wise fallback path (B % 8 != 0)
# ---------------------------------------------------------------------------

def _critic_rowwise_kernel(s0_ref, s1_ref, w1a_ref, w1b_ref, b1_ref,
                           w2c_ref, b2c_ref, out_ref):
    # s0_ref/s1_ref : (TB, dim)      w1a_ref/w1b_ref : (dim, H1)
    # b1_ref        : (1, H1)        w2c_ref         : (H1, 1)
    # b2c_ref       : (1, 1)         out_ref         : (TB, 1)
    h1 = jnp.dot(s0_ref[...], w1a_ref[...], preferred_element_type=jnp.float32)
    h1 = h1 + jnp.dot(s1_ref[...], w1b_ref[...],
                      preferred_element_type=jnp.float32)
    h1 = jnp.maximum(h1 + b1_ref[...], 0.0)

    out = jnp.dot(h1, w2c_ref[...], preferred_element_type=jnp.float32)
    out_ref[...] = jnp.maximum(out + b2c_ref[...], 0.0).astype(out_ref.dtype)


def _forward_rowwise(s0, s1, w1a, w1b, b1, w2c, b2c, tb):
    B, dim = s0.shape
    H1 = w1a.shape[1]

    # Single full block for small batches (block == array dims, always legal);
    # otherwise a multiple-of-8 tile with a Pallas-masked ragged last block.
    TB = B if B <= tb else tb
    grid = (pl.cdiv(B, TB),)

    out = pl.pallas_call(
        _critic_rowwise_kernel,
        out_shape=jax.ShapeDtypeStruct((B, 1), jnp.float32),
        grid_spec=pl.GridSpec(
            grid=grid,
            in_specs=[
                pl.BlockSpec((TB, dim), lambda i: (i, 0)),
                pl.BlockSpec((TB, dim), lambda i: (i, 0)),
                pl.BlockSpec(w1a.shape, lambda i: (0, 0)),
                pl.BlockSpec(w1b.shape, lambda i: (0, 0)),
                pl.BlockSpec(b1.shape, lambda i: (0, 0)),
                pl.BlockSpec(w2c.shape, lambda i: (0, 0)),
                pl.BlockSpec(b2c.shape, lambda i: (0, 0)),
            ],
            out_specs=pl.BlockSpec((TB, 1), lambda i: (i, 0)),
        ),
        compiler_params=pltpu.CompilerParams(
            dimension_semantics=("parallel",),
            vmem_limit_bytes=_VMEM_LIMIT,
        ),
        cost_estimate=_cost_estimate(B, dim, H1),
    )(s0, s1, w1a, w1b, b1, w2c, b2c)

    return out[:, 0]


# ---------------------------------------------------------------------------
# Public wrapper
# ---------------------------------------------------------------------------

def critic_forward(states_0, states_1, params, *, tbp=2048, tb=2048):
    """Pallas forward for the Critic MLP.  Returns shape (B,)."""
    w1, b1, w2, b2 = params
    B, dim = states_0.shape

    # Fuse the torch `cat` by splitting W1 into its two row blocks.
    w1a = w1[:dim]            # (dim, H1)
    w1b = w1[dim:]            # (dim, H1)
    # Only column 0 of layer 2 is ever used.
    w2c = w2[:, :1]           # (H1, 1)
    b2c = b2[:, :1]           # (1, 1)

    if B % _PACK == 0 and B > 0:
        return _forward_packed(states_0, states_1, w1a, w1b, b1, w2c, b2c, tbp)
    return _forward_rowwise(states_0, states_1, w1a, w1b, b1, w2c, b2c, tb)


def init_params(key, dim, net_arch=(64, 64)):
    """Deterministic parameter init mirroring nn.Linear shapes.

    Weights stored as (in_features, out_features) = torch weight transposed.
    """
    input_dim = 2 * dim
    h1, h2 = net_arch
    k1, k2, k3, k4 = jax.random.split(key, 4)
    lim1 = 1.0 / jnp.sqrt(input_dim)
    lim2 = 1.0 / jnp.sqrt(h1)
    w1 = jax.random.uniform(k1, (input_dim, h1), jnp.float32, -lim1, lim1)
    b1 = jax.random.uniform(k2, (1, h1), jnp.float32, -lim1, lim1)
    w2 = jax.random.uniform(k3, (h1, h2), jnp.float32, -lim2, lim2)
    b2 = jax.random.uniform(k4, (1, h2), jnp.float32, -lim2, lim2)
    return w1, b1, w2, b2


def _reference_forward(states_0, states_1, params):
    w1, b1, w2, b2 = params
    x = jnp.concatenate((states_0, states_1), axis=1)
    h1 = jnp.maximum(x @ w1 + b1, 0.0)
    h2 = jnp.maximum(h1 @ w2 + b2, 0.0)
    return h2[:, 0]


if __name__ == "__main__":
    key = jax.random.PRNGKey(0)
    k_p, k_data = jax.random.split(key)

    dim = 16
    params = init_params(k_p, dim, net_arch=(64, 64))

    # Coverage: packed path (B%8==0), row-wise ragged path, packed path with a
    # multi-step grid + ragged final block, and a non-default feature dim.
    configs = [(8, 16), (37, 16), (1000, 16), (24, 4)]
    for i, (batch, d) in enumerate(configs):
        kp_i, ks0, ks1 = jax.random.split(jax.random.fold_in(k_data, i), 3)
        p_i = params if d == dim else init_params(kp_i, d, net_arch=(64, 64))
        s0 = jax.random.normal(ks0, (batch, d), jnp.float32)
        s1 = jax.random.normal(ks1, (batch, d), jnp.float32)

        out = jax.block_until_ready(critic_forward(s0, s1, p_i))
        ref = _reference_forward(s0, s1, p_i)

        assert out.shape == (batch,), (out.shape, batch)
        err = jnp.max(jnp.abs(out - ref))
        assert jnp.allclose(out, ref, atol=1e-4, rtol=1e-4), (batch, d, err)

    print("KERNEL_OK")
</pallas_src>

<mosaic_0001>
module attributes {stable_mosaic.version = 11 : i64} {
  func.func @_critic_packed_kernel(%arg0: i32, %arg1: memref<1x128xf32, #tpu.memory_space<vmem>>, %arg2: memref<1x128xf32, #tpu.memory_space<vmem>>, %arg3: memref<128x512xf32, #tpu.memory_space<vmem>>, %arg4: memref<128x512xf32, #tpu.memory_space<vmem>>, %arg5: memref<1x512xf32, #tpu.memory_space<vmem>>, %arg6: memref<512x8xf32, #tpu.memory_space<vmem>>, %arg7: memref<1x1xf32, #tpu.memory_space<vmem>>, %arg8: memref<1x8xf32, #tpu.memory_space<vmem>>) attributes {dimension_semantics = [#tpu.dimension_semantics<parallel>], iteration_bounds = array<i64: 1>, scalar_prefetch = 0 : i64, scratch_operands = 0 : i64, tpu.core_type = #tpu.core_type<tc>, window_params = [{transform_indices = @transform_0, window_bounds = array<i64: 1, 128>}, {transform_indices = @transform_1, window_bounds = array<i64: 1, 128>}, {pipeline_mode = #tpu.pipeline_mode<synchronous>, transform_indices = @transform_2, window_bounds = array<i64: 128, 512>}, {pipeline_mode = #tpu.pipeline_mode<synchronous>, transform_indices = @transform_3, window_bounds = array<i64: 128, 512>}, {pipeline_mode = #tpu.pipeline_mode<synchronous>, transform_indices = @transform_4, window_bounds = array<i64: 1, 512>}, {pipeline_mode = #tpu.pipeline_mode<synchronous>, transform_indices = @transform_5, window_bounds = array<i64: 512, 8>}, {pipeline_mode = #tpu.pipeline_mode<synchronous>, transform_indices = @transform_6, window_bounds = array<i64: 1, 1>}, {transform_indices = @transform_7, window_bounds = array<i64: 1, 8>}]} {
    %c0 = arith.constant 0 : index
    %c0_0 = arith.constant 0 : index
    %0 = vector.load %arg1[%c0, %c0_0] : memref<1x128xf32, #tpu.memory_space<vmem>>, vector<1x128xf32>
    %c0_1 = arith.constant 0 : index
    %c0_2 = arith.constant 0 : index
    %1 = vector.load %arg3[%c0_1, %c0_2] : memref<128x512xf32, #tpu.memory_space<vmem>>, vector<128x512xf32>
    %cst = arith.constant dense<0.000000e+00> : vector<1x512xf32>
    %2 = tpu.matmul %0, %1, %cst {dimension_numbers = #tpu.dot_dimension_numbers<[1], [0], [0], [1], [0, 0, 1, 1], [], []>} : vector<1x128xf32>, vector<128x512xf32>, vector<1x512xf32> -> vector<1x512xf32>
    %c0_3 = arith.constant 0 : index
    %c0_4 = arith.constant 0 : index
    %3 = vector.load %arg2[%c0_3, %c0_4] : memref<1x128xf32, #tpu.memory_space<vmem>>, vector<1x128xf32>
    %c0_5 = arith.constant 0 : index
    %c0_6 = arith.constant 0 : index
    %4 = vector.load %arg4[%c0_5, %c0_6] : memref<128x512xf32, #tpu.memory_space<vmem>>, vector<128x512xf32>
    %cst_7 = arith.constant dense<0.000000e+00> : vector<1x512xf32>
    %5 = tpu.matmul %3, %4, %cst_7 {dimension_numbers = #tpu.dot_dimension_numbers<[1], [0], [0], [1], [0, 0, 1, 1], [], []>} : vector<1x128xf32>, vector<128x512xf32>, vector<1x512xf32> -> vector<1x512xf32>
    %6 = arith.addf %2, %5 : vector<1x512xf32>
    %c0_8 = arith.constant 0 : index
    %c0_9 = arith.constant 0 : index
    %7 = vector.load %arg5[%c0_8, %c0_9] : memref<1x512xf32, #tpu.memory_space<vmem>>, vector<1x512xf32>
    %8 = arith.addf %6, %7 : vector<1x512xf32>
    %cst_10 = arith.constant 0.000000e+00 : f32
    %9 = vector.broadcast %cst_10 : f32 to vector<1x512xf32>
    %10 = arith.maximumf %8, %9 : vector<1x512xf32>
    %c0_11 = arith.constant 0 : index
    %c0_12 = arith.constant 0 : index
    %11 = vector.load %arg6[%c0_11, %c0_12] : memref<512x8xf32, #tpu.memory_space<vmem>>, vector<512x8xf32>
    %cst_13 = arith.constant dense<0.000000e+00> : vector<1x8xf32>
    %12 = tpu.matmul %10, %11, %cst_13 {dimension_numbers = #tpu.dot_dimension_numbers<[1], [0], [0], [1], [0, 0, 1, 1], [], []>} : vector<1x512xf32>, vector<512x8xf32>, vector<1x8xf32> -> vector<1x8xf32>
    %c0_14 = arith.constant 0 : index
    %c0_15 = arith.constant 0 : index
    %13 = vector.load %arg7[%c0_14, %c0_15] : memref<1x1xf32, #tpu.memory_space<vmem>>, vector<1x1xf32>
    %14 = vector.broadcast %13 : vector<1x1xf32> to vector<1x8xf32>
    %15 = arith.addf %12, %14 : vector<1x8xf32>
    %cst_16 = arith.constant 0.000000e+00 : f32
    %16 = vector.broadcast %cst_16 : f32 to vector<1x8xf32>
    %17 = arith.maximumf %15, %16 : vector<1x8xf32>
    %c0_17 = arith.constant 0 : index
    %c0_18 = arith.constant 0 : index
    %18 = vector.load %arg8[%c0_17, %c0_18] : memref<1x8xf32, #tpu.memory_space<vmem>>, vector<1x8xf32>
    tpu.vector_store %arg8[%c0_17, %c0_18], %17 {strides = array<i32>} : memref<1x8xf32, #tpu.memory_space<vmem>>, vector<1x8xf32>,
    return
  }
  func.func @transform_0(%arg0: i32) -> (i32, i32) {
    %c0_i32 = arith.constant 0 : i32
    %c0_i32_0 = arith.constant 0 : i32
    return %arg0, %c0_i32 : i32, i32
  }
  func.func @transform_1(%arg0: i32) -> (i32, i32) {
    %c0_i32 = arith.constant 0 : i32
    %c0_i32_0 = arith.constant 0 : i32
    return %arg0, %c0_i32 : i32, i32
  }
  func.func @transform_2(%arg0: i32) -> (i32, i32) {
    %c0_i32 = arith.constant 0 : i32
    %c0_i32_0 = arith.constant 0 : i32
    %c0_i32_1 = arith.constant 0 : i32
    return %c0_i32, %c0_i32_0 : i32, i32
  }
  func.func @transform_3(%arg0: i32) -> (i32, i32) {
    %c0_i32 = arith.constant 0 : i32
    %c0_i32_0 = arith.constant 0 : i32
    %c0_i32_1 = arith.constant 0 : i32
    return %c0_i32, %c0_i32_0 : i32, i32
  }
  func.func @transform_4(%arg0: i32) -> (i32, i32) {
    %c0_i32 = arith.constant 0 : i32
    %c0_i32_0 = arith.constant 0 : i32
    %c0_i32_1 = arith.constant 0 : i32
    return %c0_i32, %c0_i32_0 : i32, i32
  }
  func.func @transform_5(%arg0: i32) -> (i32, i32) {
    %c0_i32 = arith.constant 0 : i32
    %c0_i32_0 = arith.constant 0 : i32
    %c0_i32_1 = arith.constant 0 : i32
    return %c0_i32, %c0_i32_0 : i32, i32
  }
  func.func @transform_6(%arg0: i32) -> (i32, i32) {
    %c0_i32 = arith.constant 0 : i32
    %c0_i32_0 = arith.constant 0 : i32
    %c0_i32_1 = arith.constant 0 : i32
    return %c0_i32, %c0_i32_0 : i32, i32
  }
  func.func @transform_7(%arg0: i32) -> (i32, i32) {
    %c0_i32 = arith.constant 0 : i32
    %c0_i32_0 = arith.constant 0 : i32
    return %arg0, %c0_i32 : i32, i32
  }
}

</mosaic_0001>

<bundles_post_ra>
// kernel: tpu_custom_call.1
= control target key start
LH: loop header
LB: loop body
LE: loop exit
PB: predicated region body
PF: predicated region fallthrough
CT: control target
= control target key end

     0   :  { %s1510_s0 = inlined_call_operand.vmem [shape: f32[1,128], index: 0, kind: input, shape index: {}]   ;;  %s1511_s1 = inlined_call_operand.vmem [shape: f32[1,128], index: 1, kind: input, shape index: {}]   ;;  %s1512_s2 = inlined_call_operand.vmem [shape: f32[128,512], index: 2, kind: input, shape index: {}]   ;;  %s1513_s3 = inlined_call_operand.hbm [shape: f32[128,512], index: 3, kind: input, shape index: {}]   ;;  %s1514_s4 = inlined_call_operand.vmem [shape: f32[1,512], index: 4, kind: input, shape index: {}]   ;;  %s1515_s5 = inlined_call_operand.vmem [shape: f32[512,8], index: 5, kind: input, shape index: {}]   ;;  %s1516_s6 = inlined_call_operand.<no memory space> [shape: f32[1,1], index: 6, kind: input, shape index: {}]   ;;  %s1517_s7 = inlined_call_operand.hbm [shape: f32[1,8], index: 7, kind: output, shape index: {}]  }
   0x1   :  { %v12_v0 = vstv %s1516_s6 }
   0x2   :  { %13 = vst [vmem:[#allocation2] sm:$0x1] %v12_v0 }
   0x3   :  { %14 = vsyncpa [#allocation4], 0 }
   0x4   :  { %15 = vsyncpa [#allocation5], 0  ;;  %s1040_s26 = smov [#allocation3]   ;;  %s992_s30 = scalar_lea.hbm %s1513_s3, 8192 }
   0x5   :  { %s27_s27 = sshll.u32 %s1040_s26, 4  ;;  %p993_p0 = scmp.ne.s32.totalorder %s1513_s3, %s992_s30  ;;  %s28_s27 = int_to_ptr.vmem [resolvable:$true] %s27_s27 }
   0x6   :  { %p996_p1 = scmp.lt.u32.totalorder %s992_s30, %s1513_s3 }
   0x8   :  { %p998_p2 = pnand %p996_p1, %p993_p0 }
   0xa   :  { %1001 = shalt.err (!%p998_p2)
}
   0xb   :  { %s1002_s6 = scalar_lea.vmem %s28_s27, 8192  ;;  %p1007_p4 = scmp.lt.s32.totalorder %s28_s27, %s28_s27 }
   0xc   :  { %p1003_p3 = scmp.ne.s32.totalorder %s28_s27, %s1002_s6  ;;  %p1008_p5 = scmp.lt.s32.totalorder %s1002_s6, %s1002_s6 }
   0xe   :  { %p1009_p6 = por %p1008_p5, %p1007_p4 }
  0x10   :  { %p1010_p7 = pnand %p1009_p6, %p1003_p3 }
  0x12   :  { %1013 = shalt.err (!%p1010_p7)
}
  0x13   :  { %s1041_s12 = smov 512   ;;  %s1042_s13 = smov 32  }
  0x14   :  { %33 = dma.hbm_to_vmem [thread:$0]  %s1513_s3, 8192, %s28_s27, [#allocation4], %s1041_s12, %s1041_s12, %s1042_s13  }
  0x15   :  { %1036 = dma.done.wait [#allocation4], 8192  }
  0x16   :  { %1037 = vsyncadd [#allocation4], 4294959104  ;;  %v1043_v1 = vmov 0.0   ;;  %v110_v2 = vld [vmem:[#allocation3 + $0x8] sm:$0xff]  ;;  %v112_v4 = vld [vmem:[#allocation3 + $0x18] sm:$0xff]  ;;  %vm702_vm0 = vcmask 57344  }
  0x17   :  { %237 = vmatprep.mubr.f32.mxu0 %v1043_v1  ;;  %308 = vmatprep.mubr.f32.mxu1 %v1043_v1  ;;  %v114_v3 = vld [vmem:[#allocation3 + $0x28] sm:$0xff]  ;;  %v116_v6 = vld [vmem:[#allocation3 + $0x38] sm:$0xff]  ;;  %v109_v7 = vld [vmem:[#allocation3] sm:$0xff] }
  0x18   :  { %v789_v5 = vpack.c.bf16 %v114_v3, %v110_v2  ;;  %v113_v8 = vld [vmem:[#allocation3 + $0x20] sm:$0xff]  ;;  %v821_v9 = vpack.c.bf16 %v116_v6, %v112_v4  ;;  %v111_v11 = vld [vmem:[#allocation3 + $0x10] sm:$0xff]  ;;  %v118_v13 = vld [vmem:[#allocation3 + $0x48] sm:$0xff] }
  0x19   :  { %v791_v10 = vpack.c.bf16 %v113_v8, %v109_v7  ;;  %v115_v12 = vld [vmem:[#allocation3 + $0x30] sm:$0xff]  ;;  %v122_v15 = vld [vmem:[#allocation3 + $0x68] sm:$0xff]  ;;  %v120_v16 = vld [vmem:[#allocation3 + $0x58] sm:$0xff] }
  0x1a   :  { %790 = vmatprep.subr.bf16.mxu0 %v789_v5  ;;  %v823_v14 = vpack.c.bf16 %v115_v12, %v111_v11  ;;  %v124_v17 = vld [vmem:[#allocation3 + $0x78] sm:$0xff]  ;;  %822 = vmatprep.subr.bf16.mxu1 %v821_v9  ;;  %v793_v18 = vpack.c.bf16 %v122_v15, %v118_v13  ;;  %v117_v20 = vld [vmem:[#allocation3 + $0x40] sm:$0xff]  ;;  %v119_v22 = vld [vmem:[#allocation3 + $0x50] sm:$0xff] }
  0x1b   :  { %792 = vmatpush1.bf16.msra.mxu0 %v791_v10  ;;  %v825_v19 = vpack.c.bf16 %v124_v17, %v120_v16  ;;  %v121_v21 = vld [vmem:[#allocation3 + $0x60] sm:$0xff]  ;;  %v123_v24 = vld [vmem:[#allocation3 + $0x70] sm:$0xff]  ;;  %v126_v25 = vld [vmem:[#allocation3 + $0x88] sm:$0xff] }
  0x1c   :  { %824 = vmatpush1.bf16.msra.mxu1 %v823_v14  ;;  %v795_v23 = vpack.c.bf16 %v121_v21, %v117_v20  ;;  %v130_v26 = vld [vmem:[#allocation3 + $0xa8] sm:$0xff]  ;;  %794 = vmatprep.subr.bf16.mxu0 %v793_v18  ;;  %v827_v27 = vpack.c.bf16 %v123_v24, %v119_v22  ;;  %v128_v29 = vld [vmem:[#allocation3 + $0x98] sm:$0xff]  ;;  %v125_v31 = vld [vmem:[#allocation3 + $0x80] sm:$0xff] }
  0x1d   :  { %826 = vmatprep.subr.bf16.mxu1 %v825_v19  ;;  %v797_v28 = vpack.c.bf16 %v130_v26, %v126_v25  ;;  %v132_v30 = vld [vmem:[#allocation3 + $0xb8] sm:$0xff]  ;;  %v129_v33 = vld [vmem:[#allocation3 + $0xa0] sm:$0xff]  ;;  %v127_v34 = vld [vmem:[#allocation3 + $0x90] sm:$0xff] }
  0x1e   :  { %v829_v32 = vpack.c.bf16 %v132_v30, %v128_v29  ;;  %v131_v35 = vld [vmem:[#allocation3 + $0xb0] sm:$0xff]  ;;  %v799_v36 = vpack.c.bf16 %v129_v33, %v125_v31  ;;  %v134_v37 = vld [vmem:[#allocation3 + $0xc8] sm:$0xff]  ;;  %v136_v39 = vld [vmem:[#allocation3 + $0xd8] sm:$0xff] }
  0x1f   :  { %796 = vmatpush1.bf16.msra.mxu0 %v795_v23  ;;  %v138_v38 = vld [vmem:[#allocation3 + $0xe8] sm:$0xff]  ;;  %v831_v40 = vpack.c.bf16 %v131_v35, %v127_v34  ;;  %v140_v42 = vld [vmem:[#allocation3 + $0xf8] sm:$0xff]  ;;  %v133_v43 = vld [vmem:[#allocation3 + $0xc0] sm:$0xff] }
  0x20   :  { %828 = vmatpush1.bf16.msra.mxu1 %v827_v27  ;;  %798 = vmatprep.subr.bf16.mxu0 %v797_v28  ;;  %v801_v41 = vpack.c.bf16 %v138_v38, %v134_v37  ;;  %v137_v44 = vld [vmem:[#allocation3 + $0xe0] sm:$0xff]  ;;  %v833_v45 = vpack.c.bf16 %v140_v42, %v136_v39  ;;  %v135_v46 = vld [vmem:[#allocation3 + $0xd0] sm:$0xff]  ;;  %v142_v48 = vld [vmem:[#allocation3 + $0x108] sm:$0xff] }
  0x21   :  { %830 = vmatprep.subr.bf16.mxu1 %v829_v32  ;;  %v139_v47 = vld [vmem:[#allocation3 + $0xf0] sm:$0xff]  ;;  %v146_v49 = vld [vmem:[#allocation3 + $0x128] sm:$0xff]  ;;  %v144_v50 = vld [vmem:[#allocation3 + $0x118] sm:$0xff]  ;;  %v803_v52 = vpack.c.bf16 %v137_v44, %v133_v43 }
  0x22   :  { %v148_v51 = vld [vmem:[#allocation3 + $0x138] sm:$0xff]  ;;  %v835_v53 = vpack.c.bf16 %v139_v47, %v135_v46  ;;  %v805_v54 = vpack.c.bf16 %v146_v49, %v142_v48  ;;  %v141_v55 = vld [vmem:[#allocation3 + $0x100] sm:$0xff]  ;;  %v143_v57 = vld [vmem:[#allocation3 + $0x110] sm:$0xff] }
  0x23   :  { %800 = vmatpush1.bf16.msra.mxu0 %v799_v36  ;;  %v145_v56 = vld [vmem:[#allocation3 + $0x120] sm:$0xff]  ;;  %v837_v58 = vpack.c.bf16 %v148_v51, %v144_v50  ;;  %v147_v59 = vld [vmem:[#allocation3 + $0x130] sm:$0xff]  ;;  %v150_v60 = vld [vmem:[#allocation3 + $0x148] sm:$0xff] }
  0x24   :  { %832 = vmatpush1.bf16.msra.mxu1 %v831_v40  ;;  %802 = vmatprep.subr.bf16.mxu0 %v801_v41  ;;  %v154_v61 = vld [vmem:[#allocation3 + $0x168] sm:$0xff]  ;;  %v152_v62 = vld [vmem:[#allocation3 + $0x158] sm:$0xff]  ;;  %v807_v0 = vpack.c.bf16 %v145_v56, %v141_v55  ;;  %v839_v2 = vpack.c.bf16 %v147_v59, %v143_v57  ;;  %v149_v4 = vld [vmem:[#allocation3 + $0x140] sm:$0xff] }
  0x25   :  { %834 = vmatprep.subr.bf16.mxu1 %v833_v45  ;;  %v156_v63 = vld [vmem:[#allocation3 + $0x178] sm:$0xff]  ;;  %v809_v3 = vpack.c.bf16 %v154_v61, %v150_v60  ;;  %v153_v5 = vld [vmem:[#allocation3 + $0x160] sm:$0xff]  ;;  %v151_v6 = vld [vmem:[#allocation3 + $0x150] sm:$0xff] }
  0x26   :  { %v841_v7 = vpack.c.bf16 %v156_v63, %v152_v62  ;;  %v155_v8 = vld [vmem:[#allocation3 + $0x170] sm:$0xff]  ;;  %v158_v9 = vld [vmem:[#allocation3 + $0x188] sm:$0xff]  ;;  %v160_v11 = vld [vmem:[#allocation3 + $0x198] sm:$0xff]  ;;  %v811_v13 = vpack.c.bf16 %v153_v5, %v149_v4 }
  0x27   :  { %804 = vmatpush1.bf16.msra.mxu0 %v803_v52  ;;  %v162_v10 = vld [vmem:[#allocation3 + $0x1a8] sm:$0xff]  ;;  %v164_v12 = vld [vmem:[#allocation3 + $0x1b8] sm:$0xff]  ;;  %v843_v14 = vpack.c.bf16 %v155_v8, %v151_v6  ;;  %v157_v16 = vld [vmem:[#allocation3 + $0x180] sm:$0xff] }
  0x28   :  { %836 = vmatpush1.bf16.msra.mxu1 %v835_v53  ;;  %806 = vmatprep.subr.bf16.mxu0 %v805_v54  ;;  %v813_v15 = vpack.c.bf16 %v162_v10, %v158_v9  ;;  %v161_v17 = vld [vmem:[#allocation3 + $0x1a0] sm:$0xff]  ;;  %v159_v18 = vld [vmem:[#allocation3 + $0x190] sm:$0xff]  ;;  %v845_v19 = vpack.c.bf16 %v164_v12, %v160_v11  ;;  %v166_v21 = vld [vmem:[#allocation3 + $0x1c8] sm:$0xff] }
  0x29   :  { %838 = vmatprep.subr.bf16.mxu1 %v837_v58  ;;  %v163_v20 = vld [vmem:[#allocation3 + $0x1b0] sm:$0xff]  ;;  %v170_v22 = vld [vmem:[#allocation3 + $0x1e8] sm:$0xff]  ;;  %v168_v23 = vld [vmem:[#allocation3 + $0x1d8] sm:$0xff]  ;;  %v815_v25 = vpack.c.bf16 %v161_v17, %v157_v16 }
  0x2a   :  { %v172_v24 = vld [vmem:[#allocation3 + $0x1f8] sm:$0xff]  ;;  %v847_v26 = vpack.c.bf16 %v163_v20, %v159_v18  ;;  %v817_v27 = vpack.c.bf16 %v170_v22, %v166_v21  ;;  %v165_v28 = vld [vmem:[#allocation3 + $0x1c0] sm:$0xff]  ;;  %v167_v30 = vld [vmem:[#allocation3 + $0x1d0] sm:$0xff] }
  0x2b   :  { %808 = vmatpush1.bf16.msra.mxu0 %v807_v0  ;;  %v169_v29 = vld [vmem:[#allocation3 + $0x1e0] sm:$0xff]  ;;  %v849_v31 = vpack.c.bf16 %v172_v24, %v168_v23  ;;  %v171_v32 = vld [vmem:[#allocation3 + $0x1f0] sm:$0xff]  ;;  %v108_v49 = vld [vmem:[%s1511_s1] sm:$0x1] }
  0x2c   :  { %840 = vmatpush1.bf16.msra.mxu1 %v839_v2  ;;  %810 = vmatprep.subr.bf16.mxu0 %v809_v3  ;;  %v45_v33 = vld [vmem:[%s1512_s2 + $0x8] sm:$0xff]  ;;  %v47_v35 = vld [vmem:[%s1512_s2 + $0x18] sm:$0xff]  ;;  %v819_v37 = vpack.c.bf16 %v169_v29, %v165_v28  ;;  %v851_v38 = vpack.c.bf16 %v171_v32, %v167_v30  ;;  %v44_v40 = vld [vmem:[%s1512_s2] sm:$0xff] }
  0x2d   :  { %842 = vmatprep.subr.bf16.mxu1 %v841_v7  ;;  %v49_v34 = vld [vmem:[%s1512_s2 + $0x28] sm:$0xff]  ;;  %v51_v36 = vld [vmem:[%s1512_s2 + $0x38] sm:$0xff]  ;;  %v48_v41 = vld [vmem:[%s1512_s2 + $0x20] sm:$0xff] }
  0x2e   :  { %v853_v39 = vpack.c.bf16 %v49_v34, %v45_v33  ;;  %v46_v42 = vld [vmem:[%s1512_s2 + $0x10] sm:$0xff]  ;;  %v885_v43 = vpack.c.bf16 %v51_v36, %v47_v35  ;;  %v53_v45 = vld [vmem:[%s1512_s2 + $0x48] sm:$0xff]  ;;  %v55_v47 = vld [vmem:[%s1512_s2 + $0x58] sm:$0xff]  ;;  %v855_v50 = vpack.c.bf16 %v48_v41, %v44_v40 }
  0x2f   :  { %812 = vmatpush1.bf16.msra.mxu0 %v811_v13  ;;  %v50_v44 = vld [vmem:[%s1512_s2 + $0x30] sm:$0xff]  ;;  %v57_v46 = vld [vmem:[%s1512_s2 + $0x68] sm:$0xff]  ;;  %v59_v48 = vld [vmem:[%s1512_s2 + $0x78] sm:$0xff] }
  0x30   :  { %844 = vmatpush1.bf16.msra.mxu1 %v843_v14  ;;  %814 = vmatprep.subr.bf16.mxu0 %v813_v15  ;;  %v887_v51 = vpack.c.bf16 %v50_v44, %v46_v42  ;;  %v857_v52 = vpack.c.bf16 %v57_v46, %v53_v45  ;;  %v52_v53 = vld [vmem:[%s1512_s2 + $0x40] sm:$0xff]  ;;  %v54_v55 = vld [vmem:[%s1512_s2 + $0x50] sm:$0xff]  ;;  %v889_v56 = vpack.c.bf16 %v59_v48, %v55_v47  ;;  %v61_v58 = vld [vmem:[%s1512_s2 + $0x88] sm:$0xff] }
  0x31   :  { %846 = vmatprep.subr.bf16.mxu1 %v845_v19  ;;  %v56_v54 = vld [vmem:[%s1512_s2 + $0x60] sm:$0xff]  ;;  %v58_v57 = vld [vmem:[%s1512_s2 + $0x70] sm:$0xff]  ;;  %v65_v59 = vld [vmem:[%s1512_s2 + $0xa8] sm:$0xff] }
  0x32   :  { %v63_v60 = vld [vmem:[%s1512_s2 + $0x98] sm:$0xff]  ;;  %v859_v62 = vpack.c.bf16 %v56_v54, %v52_v53  ;;  %v891_v63 = vpack.c.bf16 %v58_v57, %v54_v55  ;;  %v861_v0 = vpack.c.bf16 %v65_v59, %v61_v58  ;;  %v60_v2 = vld [vmem:[%s1512_s2 + $0x80] sm:$0xff]  ;;  %v62_v4 = vld [vmem:[%s1512_s2 + $0x90] sm:$0xff] }
  0x33   :  { %816 = vmatpush1.bf16.msra.mxu0 %v815_v25  ;;  %v67_v61 = vld [vmem:[%s1512_s2 + $0xb8] sm:$0xff]  ;;  %v64_v3 = vld [vmem:[%s1512_s2 + $0xa0] sm:$0xff]  ;;  %v66_v6 = vld [vmem:[%s1512_s2 + $0xb0] sm:$0xff] }
  0x34   :  { %848 = vmatpush1.bf16.msra.mxu1 %v847_v26  ;;  %818 = vmatprep.subr.bf16.mxu0 %v817_v27  ;;  %v893_v5 = vpack.c.bf16 %v67_v61, %v63_v60  ;;  %v69_v7 = vld [vmem:[%s1512_s2 + $0xc8] sm:$0xff]  ;;  %v71_v9 = vld [vmem:[%s1512_s2 + $0xd8] sm:$0xff]  ;;  %v863_v11 = vpack.c.bf16 %v64_v3, %v60_v2  ;;  %v895_v12 = vpack.c.bf16 %v66_v6, %v62_v4  ;;  %v68_v14 = vld [vmem:[%s1512_s2 + $0xc0] sm:$0xff] }
  0x35   :  { %850 = vmatprep.subr.bf16.mxu1 %v849_v31  ;;  %v73_v8 = vld [vmem:[%s1512_s2 + $0xe8] sm:$0xff]  ;;  %v75_v10 = vld [vmem:[%s1512_s2 + $0xf8] sm:$0xff]  ;;  %v72_v15 = vld [vmem:[%s1512_s2 + $0xe0] sm:$0xff] }
  0x36   :  { %v865_v13 = vpack.c.bf16 %v73_v8, %v69_v7  ;;  %v70_v16 = vld [vmem:[%s1512_s2 + $0xd0] sm:$0xff]  ;;  %v77_v18 = vld [vmem:[%s1512_s2 + $0x108] sm:$0xff]  ;;  %v79_v20 = vld [vmem:[%s1512_s2 + $0x118] sm:$0xff]  ;;  %v867_v22 = vpack.c.bf16 %v72_v15, %v68_v14 }
  0x37   :  { %820 = vmatpush1.bf16.msra.mxu0 %v819_v37  ;;  %v74_v17 = vld [vmem:[%s1512_s2 + $0xf0] sm:$0xff]  ;;  %v81_v19 = vld [vmem:[%s1512_s2 + $0x128] sm:$0xff]  ;;  %v83_v21 = vld [vmem:[%s1512_s2 + $0x138] sm:$0xff] }
  0x38   :  { %852 = vmatpush1.bf16.msra.mxu1 %v851_v38  ;;  %854 = vmatprep.subr.bf16.mxu0 %v853_v39  ;;  %v899_v23 = vpack.c.bf16 %v74_v17, %v70_v16  ;;  %v869_v24 = vpack.c.bf16 %v81_v19, %v77_v18  ;;  %v76_v25 = vld [vmem:[%s1512_s2 + $0x100] sm:$0xff]  ;;  %v78_v27 = vld [vmem:[%s1512_s2 + $0x110] sm:$0xff]  ;;  %v901_v28 = vpack.c.bf16 %v83_v21, %v79_v20  ;;  %v85_v30 = vld [vmem:[%s1512_s2 + $0x148] sm:$0xff] }
  0x39   :  { %886 = vmatprep.subr.bf16.mxu1 %v885_v43  ;;  %v80_v26 = vld [vmem:[%s1512_s2 + $0x120] sm:$0xff]  ;;  %v82_v29 = vld [vmem:[%s1512_s2 + $0x130] sm:$0xff]  ;;  %v89_v31 = vld [vmem:[%s1512_s2 + $0x168] sm:$0xff] }
  0x3a   :  { %238 = vmatmul.mubr.f32.vlgmr.msra.gmra.mrb[0].mxu0 %v108_v49  ;;  %v87_v32 = vld [vmem:[%s1512_s2 + $0x158] sm:$0xff]  ;;  %v871_v34 = vpack.c.bf16 %v80_v26, %v76_v25  ;;  %v903_v35 = vpack.c.bf16 %v82_v29, %v78_v27  ;;  %v873_v36 = vpack.c.bf16 %v89_v31, %v85_v30  ;;  %v84_v37 = vld [vmem:[%s1512_s2 + $0x140] sm:$0xff]  ;;  %v86_v39 = vld [vmem:[%s1512_s2 + $0x150] sm:$0xff] }
  0x3b   :  { %309 = vmatmul.mubr.f32.vlgmr.msra.gmra.mrb[0].mxu1 %v108_v49  ;;  %856 = vmatpush1.bf16.msra.mxu0 %v855_v50  ;;  %v91_v33 = vld [vmem:[%s1512_s2 + $0x178] sm:$0xff]  ;;  %v88_v38 = vld [vmem:[%s1512_s2 + $0x160] sm:$0xff]  ;;  %v90_v41 = vld [vmem:[%s1512_s2 + $0x170] sm:$0xff] }
  0x3c   :  { %888 = vmatpush1.bf16.msra.mxu1 %v887_v51  ;;  %858 = vmatprep.subr.bf16.mxu0 %v857_v52  ;;  %v905_v40 = vpack.c.bf16 %v91_v33, %v87_v32  ;;  %v93_v42 = vld [vmem:[%s1512_s2 + $0x188] sm:$0xff]  ;;  %v95_v44 = vld [vmem:[%s1512_s2 + $0x198] sm:$0xff]  ;;  %v875_v46 = vpack.c.bf16 %v88_v38, %v84_v37  ;;  %v907_v47 = vpack.c.bf16 %v90_v41, %v86_v39  ;;  %v92_v49 = vld [vmem:[%s1512_s2 + $0x180] sm:$0xff] }
  0x3d   :  { %890 = vmatprep.subr.bf16.mxu1 %v889_v56  ;;  %379 = vmatprep.mubr.f32.mxu0 %v1043_v1  ;;  %v97_v43 = vld [vmem:[%s1512_s2 + $0x1a8] sm:$0xff]  ;;  %v99_v45 = vld [vmem:[%s1512_s2 + $0x1b8] sm:$0xff]  ;;  %v96_v50 = vld [vmem:[%s1512_s2 + $0x1a0] sm:$0xff] }
  0x3e   :  { %450 = vmatprep.mubr.f32.mxu1 %v1043_v1  ;;  %v897_v1 = vpack.c.bf16 %v75_v10, %v71_v9  ;;  %v877_v48 = vpack.c.bf16 %v97_v43, %v93_v42  ;;  %v94_v51 = vld [vmem:[%s1512_s2 + $0x190] sm:$0xff]  ;;  %v909_v52 = vpack.c.bf16 %v99_v45, %v95_v44  ;;  %v101_v54 = vld [vmem:[%s1512_s2 + $0x1c8] sm:$0xff]  ;;  %v103_v56 = vld [vmem:[%s1512_s2 + $0x1d8] sm:$0xff]  ;;  %v879_v58 = vpack.c.bf16 %v96_v50, %v92_v49 }
  0x3f   :  { %860 = vmatpush1.bf16.msra.mxu0 %v859_v62  ;;  %v98_v53 = vld [vmem:[%s1512_s2 + $0x1b0] sm:$0xff]  ;;  %v105_v55 = vld [vmem:[%s1512_s2 + $0x1e8] sm:$0xff]  ;;  %v107_v57 = vld [vmem:[%s1512_s2 + $0x1f8] sm:$0xff] }
  0x40   :  { %892 = vmatpush1.bf16.msra.mxu1 %v891_v63  ;;  %862 = vmatprep.subr.bf16.mxu0 %v861_v0  ;;  %v911_v59 = vpack.c.bf16 %v98_v53, %v94_v51  ;;  %v881_v60 = vpack.c.bf16 %v105_v55, %v101_v54  ;;  %v100_v61 = vld [vmem:[%s1512_s2 + $0x1c0] sm:$0xff]  ;;  %v102_v63 = vld [vmem:[%s1512_s2 + $0x1d0] sm:$0xff]  ;;  %v913_v0 = vpack.c.bf16 %v107_v57, %v103_v56  ;;  %v504_v4 = vld [vmem:[%s1515_s5 + $0x88] sm:$0xff] }
  0x41   :  { %894 = vmatprep.subr.bf16.mxu1 %v893_v5  ;;  %v104_v62 = vld [vmem:[%s1512_s2 + $0x1e0] sm:$0xff]  ;;  %v106_v2 = vld [vmem:[%s1512_s2 + $0x1f0] sm:$0xff]  ;;  %v536_v6 = vld [vmem:[%s1515_s5 + $0x188] sm:$0xff] }
  0x42   :  { %v503_v3 = vld [vmem:[%s1515_s5 + $0x80] sm:$0xff]  ;;  %v883_v7 = vpack.c.bf16 %v104_v62, %v100_v61  ;;  %v915_v8 = vpack.c.bf16 %v106_v2, %v102_v63  ;;  %v520_v14 = vld [vmem:[%s1515_s5 + $0x108] sm:$0xff]  ;;  %v505_v15 = vld [vmem:[%s1515_s5 + $0x90] sm:$0xff] }
  0x43   :  { %864 = vmatpush1.bf16.msra.mxu0 %v863_v11  ;;  %v535_v5 = vld [vmem:[%s1515_s5 + $0x180] sm:$0xff]  ;;  %v917_v9 = vpack.c.bf16 %v504_v4, %v503_v3  ;;  %v488_v11 = vld [vmem:[%s1515_s5 + $0x8] sm:$0xff]  ;;  %v506_v16 = vld [vmem:[%s1515_s5 + $0x98] sm:$0xff] }
  0x44   :  { %896 = vmatpush1.bf16.msra.mxu1 %v895_v12  ;;  %866 = vmatprep.subr.bf16.mxu0 %v865_v13  ;;  %v487_v10 = vld [vmem:[%s1515_s5] sm:$0xff]  ;;  %v949_v13 = vpack.c.bf16 %v536_v6, %v535_v5  ;;  %v538_v17 = vld [vmem:[%s1515_s5 + $0x198] sm:$0xff]  ;;  %v921_v21 = vpack.c.bf16 %v506_v16, %v505_v15  ;;  %v540_v30 = vld [vmem:[%s1515_s5 + $0x1a8] sm:$0xff] }
  0x45   :  { %898 = vmatprep.subr.bf16.mxu1 %v897_v1  ;;  %v519_v12 = vld [vmem:[%s1515_s5 + $0x100] sm:$0xff]  ;;  %v537_v1 = vld [vmem:[%s1515_s5 + $0x190] sm:$0xff]  ;;  %v919_v19 = vpack.c.bf16 %v488_v11, %v487_v10  ;;  %v522_v26 = vld [vmem:[%s1515_s5 + $0x118] sm:$0xff] }
  0x46   :  { %v43_v18 = vld [vmem:[%s1510_s0] sm:$0x1]  ;;  %v951_v20 = vpack.c.bf16 %v520_v14, %v519_v12  ;;  %v953_v25 = vpack.c.bf16 %v538_v17, %v537_v1  ;;  %v524_v38 = vld [vmem:[%s1515_s5 + $0x128] sm:$0xff]  ;;  %v509_v39 = vld [vmem:[%s1515_s5 + $0xb0] sm:$0xff] }
  0x47   :  { %868 = vmatpush1.bf16.msra.mxu0 %v867_v22  ;;  %v489_v22 = vld [vmem:[%s1515_s5 + $0x10] sm:$0xff]  ;;  %v507_v27 = vld [vmem:[%s1515_s5 + $0xa0] sm:$0xff]  ;;  %v542_v42 = vld [vmem:[%s1515_s5 + $0x1b8] sm:$0xff] }
  0x48   :  { %900 = vmatpush1.bf16.msra.mxu1 %v899_v23  ;;  %870 = vmatprep.subr.bf16.mxu0 %v869_v24  ;;  %v490_v23 = vld [vmem:[%s1515_s5 + $0x18] sm:$0xff]  ;;  %v521_v24 = vld [vmem:[%s1515_s5 + $0x110] sm:$0xff]  ;;  %v539_v29 = vld [vmem:[%s1515_s5 + $0x1a0] sm:$0xff] }
  0x49   :  { %902 = vmatprep.subr.bf16.mxu1 %v901_v28  ;;  %v508_v28 = vld [vmem:[%s1515_s5 + $0xa8] sm:$0xff]  ;;  %v923_v31 = vpack.c.bf16 %v490_v23, %v489_v22  ;;  %v955_v32 = vpack.c.bf16 %v522_v26, %v521_v24  ;;  %v957_v37 = vpack.c.bf16 %v540_v30, %v539_v29  ;;  %v541_v41 = vld [vmem:[%s1515_s5 + $0x1b0] sm:$0xff]  ;;  %v526_v50 = vld [vmem:[%s1515_s5 + $0x138] sm:$0xff] }
  0x4a   :  { %v925_v33 = vpack.c.bf16 %v508_v28, %v507_v27  ;;  %v961_v49 = vpack.c.bf16 %v542_v42, %v541_v41  ;;  %v511_v51 = vld [vmem:[%s1515_s5 + $0xc0] sm:$0xff]  ;;  %v544_v54 = vld [vmem:[%s1515_s5 + $0x1c8] sm:$0xff]  ;;  %v513_v63 = vld [vmem:[%s1515_s5 + $0xd0] sm:$0xff] }
  0x4b   :  { %872 = vmatpush1.bf16.msra.mxu0 %v871_v34  ;;  %v491_v34 = vld [vmem:[%s1515_s5 + $0x20] sm:$0xff]  ;;  %v528_v62 = vld [vmem:[%s1515_s5 + $0x148] sm:$0xff]  ;;  %v545_v2 = vld [vmem:[%s1515_s5 + $0x1d0] sm:$0xff] }
  0x4c   :  { %904 = vmatpush1.bf16.msra.mxu1 %v903_v35  ;;  %874 = vmatprep.subr.bf16.mxu0 %v873_v36  ;;  %v492_v35 = vld [vmem:[%s1515_s5 + $0x28] sm:$0xff]  ;;  %v523_v36 = vld [vmem:[%s1515_s5 + $0x120] sm:$0xff]  ;;  %v546_v3 = vld [vmem:[%s1515_s5 + $0x1d8] sm:$0xff] }
  0x4d   :  { %906 = vmatprep.subr.bf16.mxu1 %v905_v40  ;;  %v510_v40 = vld [vmem:[%s1515_s5 + $0xb8] sm:$0xff]  ;;  %v927_v43 = vpack.c.bf16 %v492_v35, %v491_v34  ;;  %v959_v44 = vpack.c.bf16 %v524_v38, %v523_v36  ;;  %v543_v53 = vld [vmem:[%s1515_s5 + $0x1c0] sm:$0xff]  ;;  %v969_v10 = vpack.c.bf16 %v546_v3, %v545_v2  ;;  %v548_v15 = vld [vmem:[%s1515_s5 + $0x1e8] sm:$0xff]  ;;  %v1044_v38 = vmov 0  }
  0x4e   :  { %v929_v45 = vpack.c.bf16 %v510_v40, %v509_v39  ;;  %v965_v61 = vpack.c.bf16 %v544_v54, %v543_v53  ;;  %v530_v11 = vld [vmem:[%s1515_s5 + $0x158] sm:$0xff]  ;;  %v515_v12 = vld [vmem:[%s1515_s5 + $0xe0] sm:$0xff]  ;;  %v532_v23 = vld [vmem:[%s1515_s5 + $0x168] sm:$0xff]  ;;  %991 = vset.pattern.permute.xlu0 %v1044_v38  ;;  %v459_v39 = vlaneseq }
  0x4f   :  { %876 = vmatpush1.bf16.msra.mxu0 %v875_v46  ;;  %v493_v46 = vld [vmem:[%s1515_s5 + $0x30] sm:$0xff]  ;;  %v547_v14 = vld [vmem:[%s1515_s5 + $0x1e0] sm:$0xff]  ;;  %v518_v26 = vld [vmem:[%s1515_s5 + $0xf8] sm:$0xff] }
  0x50   :  { %908 = vmatpush1.bf16.msra.mxu1 %v907_v47  ;;  %878 = vmatprep.subr.bf16.mxu0 %v877_v48  ;;  %v494_v47 = vld [vmem:[%s1515_s5 + $0x38] sm:$0xff]  ;;  %v525_v48 = vld [vmem:[%s1515_s5 + $0x130] sm:$0xff]  ;;  %v460_v40 = vshrl.u32 %v459_v39, 7  ;;  %v457_v42 = vld [vmem:[%s1514_s4] sm:$0xf]  ;;  %s1045_s4 = smov [#allocation6]  }
  0x51   :  { %910 = vmatprep.subr.bf16.mxu1 %v909_v52  ;;  %v512_v52 = vld [vmem:[%s1515_s5 + $0xc8] sm:$0xff]  ;;  %v931_v55 = vpack.c.bf16 %v494_v47, %v493_v46  ;;  %v963_v56 = vpack.c.bf16 %v526_v50, %v525_v48  ;;  %v549_v27 = vld [vmem:[%s1515_s5 + $0x1f0] sm:$0xff]  ;;  %v550_v29 = vld [vmem:[%s1515_s5 + $0x1f8] sm:$0xff] }
  0x52   :  { %v933_v57 = vpack.c.bf16 %v512_v52, %v511_v51  ;;  %v501_v30 = vld [vmem:[%s1515_s5 + $0x70] sm:$0xff]  ;;  %v534_v35 = vld [vmem:[%s1515_s5 + $0x178] sm:$0xff]  ;;  %v461_v41 = vsub.s32 0, %v460_v40 }
  0x53   :  { %880 = vmatpush1.bf16.msra.mxu0 %v879_v58  ;;  %v495_v58 = vld [vmem:[%s1515_s5 + $0x40] sm:$0xff]  ;;  %v533_v34 = vld [vmem:[%s1515_s5 + $0x170] sm:$0xff] }
  0x54   :  { %912 = vmatpush1.bf16.msra.mxu1 %v911_v59  ;;  %882 = vmatprep.subr.bf16.mxu0 %v881_v60  ;;  %v496_v59 = vld [vmem:[%s1515_s5 + $0x48] sm:$0xff]  ;;  %v527_v60 = vld [vmem:[%s1515_s5 + $0x140] sm:$0xff]  ;;  %v979_v36 = vpack.c.bf16 %v534_v35, %v533_v34  ;;  %v462_v46 = vrot.slane %v457_v42, %v461_v41 }
  0x55   :  { %914 = vmatprep.subr.bf16.mxu1 %v913_v0  ;;  %v514_v0 = vld [vmem:[%s1515_s5 + $0xd8] sm:$0xff]  ;;  %v935_v4 = vpack.c.bf16 %v496_v59, %v495_v58  ;;  %v967_v5 = vpack.c.bf16 %v528_v62, %v527_v60 }
  0x56   :  { %v937_v6 = vpack.c.bf16 %v514_v0, %v513_v63 }
  0x57   :  { %884 = vmatpush1.bf16.msra.mxu0 %v883_v7  ;;  %v497_v7 = vld [vmem:[%s1515_s5 + $0x50] sm:$0xff] }
  0x58   :  { %916 = vmatpush1.bf16.msra.mxu1 %v915_v8  ;;  %918 = vmatprep.subr.bf16.mxu0 %v917_v9  ;;  %v498_v8 = vld [vmem:[%s1515_s5 + $0x58] sm:$0xff]  ;;  %v529_v9 = vld [vmem:[%s1515_s5 + $0x150] sm:$0xff] }
  0x59   :  { %950 = vmatprep.subr.bf16.mxu1 %v949_v13  ;;  %v516_v13 = vld [vmem:[%s1515_s5 + $0xe8] sm:$0xff]  ;;  %v939_v16 = vpack.c.bf16 %v498_v8, %v497_v7  ;;  %v971_v1 = vpack.c.bf16 %v530_v11, %v529_v9 }
  0x5a   :  { %380 = vmatmul.mubr.f32.vlgmr.msra.gmra.mrb[0].mxu0 %v43_v18  ;;  %v941_v17 = vpack.c.bf16 %v516_v13, %v515_v12 }
  0x5b   :  { %451 = vmatmul.mubr.f32.vlgmr.msra.gmra.mrb[0].mxu1 %v43_v18  ;;  %920 = vmatpush3.bf16.msra.mxu0 %v919_v19  ;;  %v973_v18 = vpack.c.bf16 %v548_v15, %v547_v14  ;;  %v499_v19 = vld [vmem:[%s1515_s5 + $0x60] sm:$0xff] }
  0x5c   :  { %952 = vmatpush3.bf16.msra.mxu1 %v951_v20  ;;  %922 = vmatprep.subr.bf16.mxu0 %v921_v21  ;;  %v500_v20 = vld [vmem:[%s1515_s5 + $0x68] sm:$0xff]  ;;  %v531_v21 = vld [vmem:[%s1515_s5 + $0x160] sm:$0xff] }
  0x5d   :  { %954 = vmatprep.subr.bf16.mxu1 %v953_v25  ;;  %v943_v22 = vpack.c.bf16 %v500_v20, %v499_v19  ;;  %v975_v24 = vpack.c.bf16 %v532_v23, %v531_v21  ;;  %v517_v25 = vld [vmem:[%s1515_s5 + $0xf0] sm:$0xff] }
  0x5e   :  { %v945_v28 = vpack.c.bf16 %v518_v26, %v517_v25 }
  0x5f   :  { %924 = vmatpush3.bf16.msra.mxu0 %v923_v31  ;;  %v502_v31 = vld [vmem:[%s1515_s5 + $0x78] sm:$0xff]  ;;  %s710_s5 = sshll.u32 %s1045_s4, 4  ;;  %s711_s5 = int_to_ptr.vmem [resolvable:$true] %s710_s5 }
  0x60   :  { %956 = vmatpush3.bf16.msra.mxu1 %v955_v32  ;;  %926 = vmatprep.subr.bf16.mxu0 %v925_v33  ;;  %v977_v32 = vpack.c.bf16 %v550_v29, %v549_v27  ;;  %v947_v33 = vpack.c.bf16 %v502_v31, %v501_v30  ;;  %s1014_s11 = scalar_lea.vmem %s711_s5, 16  ;;  %s1018_s6 = scalar_lea.vmem %s711_s5, 32 }
  0x61   :  { %958 = vmatprep.subr.bf16.mxu1 %v957_v37  ;;  %v551_v37 = vld [vmem:[#allocation2] sm:$0x1]  ;;  %p1015_p8 = scmp.ne.s32.totalorder %s711_s5, %s1014_s11  ;;  %p1019_p9 = scmp.lt.s32.totalorder %s711_s5, %s711_s5 }
  0x62   :  { %554 = vperm.xlu0 %991, %v551_v37   ;;  %p1020_p10 = scmp.lt.s32.totalorder %s1018_s6, %s1014_s11 }
  0x63   :  { %928 = vmatpush3.bf16.msra.mxu0 %v927_v43  ;;  %v469_v43 = vsub.s32 2, %v460_v40 }
  0x64   :  { %960 = vmatpush3.bf16.msra.mxu1 %v959_v44  ;;  %930 = vmatprep.subr.bf16.mxu0 %v929_v45  ;;  %v465_v44 = vsub.s32 1, %v460_v40  ;;  %v473_v45 = vsub.s32 3, %v460_v40  ;;  %p1021_p11 = por %p1020_p10, %p1019_p9 }
  0x65   :  { %962 = vmatprep.subr.bf16.mxu1 %v961_v49  ;;  %v470_v47 = vrot.slane %v457_v42, %v469_v43 }
  0x66   :  { %v466_v48 = vrot.slane %v457_v42, %v465_v44  ;;  %v474_v49 = vrot.slane %v457_v42, %v473_v45  ;;  %p1022_p12 = pnand %p1021_p11, %p1015_p8 }
  0x67   :  { %932 = vmatpush3.bf16.msra.mxu0 %v931_v55 }
  0x68   :  { %964 = vmatpush3.bf16.msra.mxu1 %v963_v56  ;;  %934 = vmatprep.subr.bf16.mxu0 %v933_v57 }
  0x69   :  { %966 = vmatprep.subr.bf16.mxu1 %v965_v61 }
  0x6b   :  { %936 = vmatpush3.bf16.msra.mxu0 %v935_v4 }
  0x6c   :  { %968 = vmatpush3.bf16.msra.mxu1 %v967_v5  ;;  %938 = vmatprep.subr.bf16.mxu0 %v937_v6 }
  0x6d   :  { %970 = vmatprep.subr.bf16.mxu1 %v969_v10 }
  0x6f   :  { %940 = vmatpush3.bf16.msra.mxu0 %v939_v16 }
  0x70   :  { %972 = vmatpush3.bf16.msra.mxu1 %v971_v1  ;;  %942 = vmatprep.subr.bf16.mxu0 %v941_v17 }
  0x71   :  { %974 = vmatprep.subr.bf16.mxu1 %v973_v18 }
  0x73   :  { %944 = vmatpush3.bf16.msra.mxu0 %v943_v22 }
  0x74   :  { %976 = vmatpush3.bf16.msra.mxu1 %v975_v24  ;;  %946 = vmatprep.subr.bf16.mxu0 %v945_v28 }
  0x75   :  { %978 = vmatprep.subr.bf16.mxu1 %v977_v32 }
  0x77   :  { %948 = vmatpush3.bf16.msra.mxu0 %v947_v33 }
  0x78   :  { %980 = vmatpush3.bf16.msra.mxu1 %v979_v36 }
  0xe1   :  { %v555_v62 = vpop.permute.xlu0 %554 }
  0xe2   :  { %v560_v0 = vrot.slane %v555_v62, %v461_v41 }
 0x12d   :  { %v381_v50 = vpop.f32.mrb[0].mxu0 }
 0x12e   :  { %v479_v51 = vadd.f32 %v462_v46, %v381_v50  ;;  %v452_v52 = vpop.f32.mrb[0].mxu1  ;;  %v383_v53 = vpop.f32.mrb[1].mxu0 }
 0x12f   :  { %v481_v54 = vadd.f32 %v470_v47, %v452_v52  ;;  %v480_v55 = vadd.f32 %v466_v48, %v383_v53  ;;  %v454_v56 = vpop.f32.mrb[1].mxu1 }
 0x130   :  { %v482_v57 = vadd.f32 %v474_v49, %v454_v56  ;;  %v483_v59 = vmax.f32 %v479_v51, 0.0 }
 0x131   :  { %v484_v58 = vmax.f32 %v480_v55, 0.0  ;;  %v485_v61 = vmax.f32 %v481_v54, 0.0 }
 0x132   :  { %v486_v60 = vmax.f32 %v482_v57, 0.0 }
 0x133   :  { %625 = vmatprep.mubr.f32.mxu0 %v484_v58 }
 0x134   :  { %695 = vmatprep.mubr.f32.mxu1 %v486_v60  ;;  %626 = vmatmul.mubr.f32.vlgmr.msra.gmra.mrb[2].mxu0 %v483_v59 }
 0x135   :  { %696 = vmatmul.mubr.f32.vlgmr.msra.gmra.mrb[2].mxu1 %v485_v61 }
 0x207   :  { %v751_v63 = vpop.f32.mrb[2].mxu0 }
 0x208   :  { %v786_v2 = vpop.f32.mrb[2].mxu1  ;;  %v752_v3 = vpop.f32.mrb[3].mxu0 }
 0x209   :  { %v753_v4 = vadd.f32 %v752_v3, %v751_v63  ;;  %v787_v5 = vpop.f32.mrb[3].mxu1 }
 0x20a   :  { %v788_v6 = vadd.f32 %v787_v5, %v786_v2 }
 0x20b   :  { %v628_v7 = vadd.f32 %v753_v4, %v560_v0 }
 0x20d   :  { %v698_v8 = vadd.f32 %v788_v6, %v628_v7 }
 0x20f   :  { %v701_v9 = vmax.f32 %v698_v8, 0.0 }
 0x211   :  { %703 = vst.msk [vmem:[#allocation6] sm:$0x1] %vm702_vm0, %v701_v9 }
 0x212   :  { %1025 = shalt.err (!%p1022_p12)
}
 0x213   :  { %s1026_s14 = scalar_lea.hbm %s1517_s7, 16 }
 0x214   :  { %p1027_p13 = scmp.ne.s32.totalorder %s1517_s7, %s1026_s14  ;;  %p1030_p0 = scmp.lt.u32.totalorder %s1026_s14, %s1517_s7 }
 0x216   :  { %p1032_p1 = pnand %p1030_p0, %p1027_p13 }
 0x218   :  { %1035 = shalt.err (!%p1032_p1)
}
 0x219   :  { %713 = dma.vmem_to_hbm [thread:$0]  %s711_s5, 16, %s1517_s7, [#allocation5]  }
 0x21a   :  { %1038 = dma.done.wait [#allocation5], 16  }
 0x21b   :  { %1039 = vsyncadd [#allocation5], 4294967280 }
 0x21c   :  { %717 = vsyncpa [#allocation4], 1 }
 0x21d   :  { %718 = vsyncpa [#allocation5], 1 }

</bundles_post_ra>
